<compile_context>
chip_gen: v7x
topology: tpu7x:2x2x1
jax: 0.10.0
libtpu: 0.0.40
codegen_flags: <defaults>
</compile_context>

<pallas_src>
import functools

import jax
import jax.numpy as jnp
from jax.experimental import pallas as pl
from jax.experimental.pallas import tpu as pltpu

_LANES = 128
_MAX_TILE_ROWS = 16384


def _cdiv(a, b):
    return -(-a // b)


def _round_up(a, m):
    return _cdiv(a, m) * m


def _sublane(dtype):
    return {4: 8, 2: 16, 1: 32}.get(jnp.dtype(dtype).itemsize, 8)


def _vmem_capacity_bytes():
    try:
        cap = getattr(pltpu.get_tpu_info(), "vmem_capacity_bytes", None)
        if cap:
            return int(cap)
    except Exception:
        pass
    return 64 * 1024 * 1024  # conservative fallback (v7x per-core VMEM)


def _mmd_partial_kernel(num_groups_padded, n_rows, n_row_blocks, mask_x_rows,
                        n_feat_rows, n_feat_blocks,
                        x_ref, ds_ref, f_ref, fo_ref,
                        gsum_ref, cnt_ref, sq_ref):
    i = pl.program_id(1)
    step = pl.program_id(0) * pl.num_programs(1) + i

    # ---- init this core's partial accumulators (outputs are the accumulators)
    @pl.when(i == 0)
    def _():
        gsum_ref[...] = jnp.zeros_like(gsum_ref)
        cnt_ref[...] = jnp.zeros_like(cnt_ref)
        sq_ref[...] = jnp.zeros_like(sq_ref)

    # ---- per-tile group sums / counts via one lane-dense one-hot MXU matmul -
    tn = x_ref.shape[0]
    x = x_ref[...]                                   # (TN, D), original dtype
    ds = ds_ref[0]                                   # (1, TN) int32 (pad = -1)

    if mask_x_rows:
        # zero rows past the true end of x (ragged last tile / clamped tail
        # steps): mandatory because OOB rows may hold non-finite garbage.
        xblk = jnp.minimum(step, n_row_blocks - 1)
        row_id = xblk * tn + jax.lax.broadcasted_iota(jnp.int32, (tn, 1), 0)
        x = jnp.where(row_id < n_rows, x, 0)

    gids = jax.lax.broadcasted_iota(jnp.int32, (num_groups_padded, tn), 0)
    onehot = gids == ds                              # (Gp, TN); pad rows never match

    gsum_ref[...] += jax.lax.dot_general(
        onehot.astype(x.dtype), x,
        dimension_numbers=(((1,), (0,)), ((), ())),
        preferred_element_type=jnp.float32)[None]    # (1, Gp, D)
    cnt_ref[...] += jnp.sum(onehot.astype(jnp.int32), axis=1,
                            keepdims=True)[None]     # (1, Gp, 1)

    # ---- streamed partial sum for 0.5 * MSE(feature, feature_out) -----------
    @pl.when(step < n_feat_blocks)
    def _():
        tf = f_ref.shape[0]
        f = f_ref[...].astype(jnp.float32)
        fo = fo_ref[...].astype(jnp.float32)
        rows = step * tf + jax.lax.broadcasted_iota(jnp.int32, f.shape, 0)
        df = jnp.where(rows < n_feat_rows, f - fo, 0.0)
        sq_ref[...] += jnp.sum(df * df)


@functools.partial(jax.jit,
                   static_argnames=("dataset_num", "num_core_splits",
                                    "max_tile_rows"))
def mmd_loss(x, dataset, feature, feature_out, *, dataset_num,
             num_core_splits=2, max_tile_rows=_MAX_TILE_ROWS):
    """Pallas implementation of MMDLoss.forward. Returns a scalar float32."""
    # x.squeeze() -> (N, D); matches torch for the intended (N,1,D)/(N,D)
    # inputs, other exotic shapes fall back to (N, prod(rest)).
    x2 = jnp.squeeze(x)
    if x2.ndim != 2:
        x2 = x.reshape(x.shape[0], -1)
    N, D = x2.shape

    f2 = feature.reshape(feature.shape[0], -1)
    fo2 = feature_out.reshape(feature_out.shape[0], -1)
    NF, F = f2.shape
    n_feat_elems = NF * F

    ds1 = dataset.reshape(-1).astype(jnp.int32)

    NC = int(num_core_splits)
    sub_x = _sublane(x2.dtype)
    sub_f = _sublane(f2.dtype)
    Gp = max(8, _round_up(int(dataset_num), 8))

    # ---- VMEM-budgeted, dtype-aware tile sizes -------------------------------
    vmem_cap = _vmem_capacity_bytes()                 # 64 MiB v7x, 128 MiB v5e/v6e
    vmem_limit = min(vmem_cap * 3 // 4, 100 * 1024 * 1024)
    budget = vmem_limit * 85 // 100

    Dl = _round_up(D, _LANES)
    Fl = _round_up(F, _LANES)
    xsz = jnp.dtype(x2.dtype).itemsize
    fsz = jnp.dtype(f2.dtype).itemsize

    x_bytes_per_row = 3 * Dl * xsz                    # 2 pipeline bufs + masked copy
    f_bytes_per_row = 4 * Fl * fsz + 2 * Fl * 4       # f/fo double-buffered + f32 temps

    mtr_x = max(sub_x, (int(max_tile_rows) // sub_x) * sub_x)
    mtr_f = max(sub_f, (int(max_tile_rows) // sub_f) * sub_f)

    TN = (budget * 50 // 100) // x_bytes_per_row
    TN = max(sub_x, (TN // sub_x) * sub_x)
    TN = min(TN, _round_up(N, sub_x), mtr_x)

    TF = (budget * 30 // 100) // f_bytes_per_row
    TF = max(sub_f, (TF // sub_f) * sub_f)
    TF = min(TF, _round_up(NF, sub_f), mtr_f)

    # balance both streams over a common grid of NC * inner steps
    inner = _cdiv(max(_cdiv(N, TN), _cdiv(NF, TF)), NC)
    total = NC * inner
    TN = min(TN, _round_up(_cdiv(N, total), sub_x))
    TF = min(TF, _round_up(_cdiv(NF, total), sub_f))
    nx = _cdiv(N, TN)        # real x row-tiles     (<= total)
    nf = _cdiv(NF, TF)       # real feature tiles   (<= total)
    mask_x = (nx != total) or (nx * TN != N)

    # Only the tiny label vector gets padded (value -1 matches no group);
    # x / feature / feature_out stream un-padded straight from HBM.
    ds3 = jnp.pad(ds1, (0, total * TN - N),
                  constant_values=-1).reshape(total, 1, TN)

    kernel = functools.partial(_mmd_partial_kernel,
                               Gp, N, nx, bool(mask_x), NF, nf)

    gsum_p, cnt_p, sq_p = pl.pallas_call(
        kernel,
        out_shape=(jax.ShapeDtypeStruct((NC, Gp, D), jnp.float32),
                   jax.ShapeDtypeStruct((NC, Gp, 1), jnp.int32),
                   jax.ShapeDtypeStruct((NC, 1, 1), jnp.float32)),
        grid=(NC, inner),
        in_specs=[
            pl.BlockSpec((TN, D),
                         lambda c, i: (jnp.minimum(c * inner + i, nx - 1), 0)),
            pl.BlockSpec((1, 1, TN), lambda c, i: (c * inner + i, 0, 0)),
            pl.BlockSpec((TF, F),
                         lambda c, i: (jnp.minimum(c * inner + i, nf - 1), 0)),
            pl.BlockSpec((TF, F),
                         lambda c, i: (jnp.minimum(c * inner + i, nf - 1), 0)),
        ],
        out_specs=(
            pl.BlockSpec((1, Gp, D), lambda c, i: (c, 0, 0)),
            pl.BlockSpec((1, Gp, 1), lambda c, i: (c, 0, 0)),
            pl.BlockSpec((1, 1, 1), lambda c, i: (c, 0, 0)),
        ),
        compiler_params=pltpu.CompilerParams(
            dimension_semantics=("parallel", "arbitrary"),
            vmem_limit_bytes=int(vmem_limit)),
    )(x2, ds3, f2, fo2)

    # ---- tiny (G x D) finalize in plain JAX (per v7x 2-core-split advice) ----
    gsum = jnp.sum(gsum_p, axis=0)                          # (Gp, D) f32
    cnt = jnp.sum(cnt_p, axis=0)[:, 0].astype(jnp.float32)  # (Gp,)
    sq = jnp.sum(sq_p)

    mean0 = gsum[0] / cnt[0]          # 0/0 -> nan, matching torch's empty mean
    loss = jnp.float32(0.0)
    for g in range(1, int(dataset_num)):
        cg = cnt[g]
        mean_g = gsum[g] / jnp.maximum(cg, 1.0)
        mse_g = jnp.mean((mean0 - mean_g) ** 2)
        loss = loss + jnp.where(cg > 0.0, mse_g, jnp.float32(0.0))  # len(target)>0
    return loss + 0.5 * sq / jnp.float32(n_feat_elems)


def _reference_mmd(x, dataset, feature, feature_out, dataset_num):
    """Plain-JAX mirror of the PyTorch forward for verification."""
    xs = jnp.squeeze(x)
    if xs.ndim != 2:
        xs = x.reshape(x.shape[0], -1)
    xs = xs.astype(jnp.float32)
    m0 = dataset == 0
    mean0 = jnp.sum(jnp.where(m0[:, None], xs, 0.0), axis=0) / jnp.sum(m0)
    loss = jnp.float32(0.0)
    for i in range(1, dataset_num):
        mi = dataset == i
        c = jnp.sum(mi)
        meani = (jnp.sum(jnp.where(mi[:, None], xs, 0.0), axis=0)
                 / jnp.maximum(c, 1))
        loss = loss + jnp.where(c > 0, jnp.mean((mean0 - meani) ** 2), 0.0)
    ferr = feature.astype(jnp.float32) - feature_out.astype(jnp.float32)
    return loss + 0.5 * jnp.mean(ferr ** 2)


if __name__ == "__main__":
    key = jax.random.PRNGKey(0)
    k_x, k_f, k_fo, k_x3, k_f3, k_fo3 = jax.random.split(key, 6)

    dataset_num = 3
    N, D, F = 28, 48, 64           # D, F not multiples of 128 -> ragged lanes
    x = jax.random.normal(k_x, (N, 1, D), dtype=jnp.float32)   # exercises squeeze
    dataset = (jnp.arange(N) % dataset_num).astype(jnp.int32)
    feature = jax.random.normal(k_f, (N, F), dtype=jnp.float32)
    feature_out = jax.random.normal(k_fo, (N, F), dtype=jnp.float32)

    # 1) small tiles -> multi-step accumulation + ragged last tiles
    out = mmd_loss(x, dataset, feature, feature_out,
                   dataset_num=dataset_num, max_tile_rows=8)
    out = jax.block_until_ready(out)
    ref = _reference_mmd(x, dataset, feature, feature_out, dataset_num)
    assert jnp.allclose(out, ref, rtol=1e-5, atol=1e-5), (out, ref)

    # 2) group 2 empty -> exercises the `len(target) > 0` guard
    dataset2 = (jnp.arange(N) % 2).astype(jnp.int32)
    out2 = mmd_loss(x, dataset2, feature, feature_out,
                    dataset_num=dataset_num, max_tile_rows=8)
    out2 = jax.block_until_ready(out2)
    ref2 = _reference_mmd(x, dataset2, feature, feature_out, dataset_num)
    assert jnp.allclose(out2, ref2, rtol=1e-5, atol=1e-5), (out2, ref2)

    # 3) row count that leaves clamped tail grid steps + masked partial tiles
    N3, D3, F3 = 20, 40, 24
    x3 = jax.random.normal(k_x3, (N3, 1, D3), dtype=jnp.float32)
    dataset3 = (jnp.arange(N3) % dataset_num).astype(jnp.int32)
    feature3 = jax.random.normal(k_f3, (N3, F3), dtype=jnp.float32)
    feature_out3 = jax.random.normal(k_fo3, (N3, F3), dtype=jnp.float32)
    out3 = mmd_loss(x3, dataset3, feature3, feature_out3,
                    dataset_num=dataset_num, max_tile_rows=8)
    out3 = jax.block_until_ready(out3)
    ref3 = _reference_mmd(x3, dataset3, feature3, feature_out3, dataset_num)
    assert jnp.allclose(out3, ref3, rtol=1e-5, atol=1e-5), (out3, ref3)

    # 4) production path: VMEM-budget-derived tile sizes (no override)
    out4 = mmd_loss(x, dataset, feature, feature_out, dataset_num=dataset_num)
    out4 = jax.block_until_ready(out4)
    assert jnp.allclose(out4, ref, rtol=1e-5, atol=1e-5), (out4, ref)

    print("KERNEL_OK")
</pallas_src>

<mosaic_0001>
module attributes {stable_mosaic.version = 11 : i64} {
  func.func @_mmd_partial_kernel(%arg0: i32, %arg1: i32, %arg2: memref<8x48xf32, #tpu.memory_space<vmem>>, %arg3: memref<1x1x8xi32, #tpu.memory_space<vmem>>, %arg4: memref<8x64xf32, #tpu.memory_space<vmem>>, %arg5: memref<8x64xf32, #tpu.memory_space<vmem>>, %arg6: memref<1x8x48xf32, #tpu.memory_space<vmem>>, %arg7: memref<1x8x1xi32, #tpu.memory_space<vmem>>, %arg8: memref<1x1x1xf32, #tpu.memory_space<vmem>>) attributes {dimension_semantics = [#tpu.dimension_semantics<parallel>, #tpu.dimension_semantics<arbitrary>], iteration_bounds = array<i64: 2, 2>, scalar_prefetch = 0 : i64, scratch_operands = 0 : i64, tpu.core_type = #tpu.core_type<tc>, window_params = [{transform_indices = @transform_0, window_bounds = array<i64: 8, 48>}, {transform_indices = @transform_1, window_bounds = array<i64: 1, 1, 8>}, {transform_indices = @transform_2, window_bounds = array<i64: 8, 64>}, {transform_indices = @transform_3, window_bounds = array<i64: 8, 64>}, {transform_indices = @transform_4, window_bounds = array<i64: 1, 8, 48>}, {transform_indices = @transform_5, window_bounds = array<i64: 1, 8, 1>}, {transform_indices = @transform_6, window_bounds = array<i64: 1, 1, 1>}]} {
    %c2_i32 = arith.constant 2 : i32
    %0 = arith.muli %arg0, %c2_i32 : i32
    %1 = arith.addi %0, %arg1 : i32
    %c0_i32 = arith.constant 0 : i32
    %2 = arith.cmpi eq, %arg1, %c0_i32 : i32
    %3 = arith.extui %2 : i1 to i32
    %c0_i32_0 = arith.constant 0 : i32
    %4 = arith.cmpi ne, %3, %c0_i32_0 : i32
    scf.if %4 {
      %cst_20 = arith.constant 0.000000e+00 : f32
      %40 = vector.broadcast %cst_20 : f32 to vector<1x8x48xf32>
      %c0_21 = arith.constant 0 : index
      %c0_22 = arith.constant 0 : index
      %c0_23 = arith.constant 0 : index
      %41 = vector.load %arg6[%c0_21, %c0_22, %c0_23] : memref<1x8x48xf32, #tpu.memory_space<vmem>>, vector<1x8x48xf32>
      tpu.vector_store %arg6[%c0_21, %c0_22, %c0_23], %40 {strides = array<i32>} : memref<1x8x48xf32, #tpu.memory_space<vmem>>, vector<1x8x48xf32>,
      %c0_i32_24 = arith.constant 0 : i32
      %42 = vector.broadcast %c0_i32_24 : i32 to vector<1x8x1xi32>
      %c0_25 = arith.constant 0 : index
      %c0_26 = arith.constant 0 : index
      %c0_27 = arith.constant 0 : index
      %43 = vector.load %arg7[%c0_25, %c0_26, %c0_27] : memref<1x8x1xi32, #tpu.memory_space<vmem>>, vector<1x8x1xi32>
      tpu.vector_store %arg7[%c0_25, %c0_26, %c0_27], %42 {strides = array<i32>} : memref<1x8x1xi32, #tpu.memory_space<vmem>>, vector<1x8x1xi32>,
      %cst_28 = arith.constant 0.000000e+00 : f32
      %44 = vector.broadcast %cst_28 : f32 to vector<1x1x1xf32>
      %c0_29 = arith.constant 0 : index
      %c0_30 = arith.constant 0 : index
      %c0_31 = arith.constant 0 : index
      %45 = vector.load %arg8[%c0_29, %c0_30, %c0_31] : memref<1x1x1xf32, #tpu.memory_space<vmem>>, vector<1x1x1xf32>
      tpu.vector_store %arg8[%c0_29, %c0_30, %c0_31], %44 {strides = array<i32>} : memref<1x1x1xf32, #tpu.memory_space<vmem>>, vector<1x1x1xf32>,
    } else {
    }
    %c0 = arith.constant 0 : index
    %c0_1 = arith.constant 0 : index
    %5 = vector.load %arg2[%c0, %c0_1] : memref<8x48xf32, #tpu.memory_space<vmem>>, vector<8x48xf32>
    %c0_2 = arith.constant 0 : index
    %c0_3 = arith.constant 0 : index
    %c0_4 = arith.constant 0 : index
    %6 = vector.load %arg3[%c0_2, %c0_3, %c0_4] : memref<1x1x8xi32, #tpu.memory_space<vmem>>, vector<1x1x8xi32>
    %7 = vector.shape_cast %6 : vector<1x1x8xi32> to vector<1x8xi32>
    %c3_i32 = arith.constant 3 : i32
    %8 = arith.minsi %1, %c3_i32 : i32
    %c8_i32 = arith.constant 8 : i32
    %9 = arith.muli %8, %c8_i32 : i32
    %10 = tpu.iota {dimensions = array<i32: 0>} : vector<8x1xi32>
    %11 = vector.broadcast %9 : i32 to vector<8x1xi32>
    %12 = arith.addi %11, %10 : vector<8x1xi32>
    %c28_i32 = arith.constant 28 : i32
    %13 = vector.broadcast %c28_i32 : i32 to vector<8x1xi32>
    %14 = arith.cmpi slt, %12, %13 : vector<8x1xi32>
    %c0_i32_5 = arith.constant 0 : i32
    %15 = arith.sitofp %c0_i32_5 : i32 to f32
    %16 = vector.shape_cast %14 : vector<8x1xi1> to vector<8x1xi1>
    %17 = vector.broadcast %16 : vector<8x1xi1> to vector<8x48xi1>
    %18 = vector.broadcast %15 : f32 to vector<8x48xf32>
    %19 = arith.select %17, %5, %18 : vector<8x48xi1>, vector<8x48xf32>
    %20 = tpu.iota {dimensions = array<i32: 0>} : vector<8x8xi32>
    %21 = vector.broadcast %7 : vector<1x8xi32> to vector<8x8xi32>
    %22 = arith.cmpi eq, %20, %21 : vector<8x8xi32>
    %c0_6 = arith.constant 0 : index
    %c0_7 = arith.constant 0 : index
    %c0_8 = arith.constant 0 : index
    %23 = vector.load %arg6[%c0_6, %c0_7, %c0_8] : memref<1x8x48xf32, #tpu.memory_space<vmem>>, vector<1x8x48xf32>
    %24 = arith.extui %22 : vector<8x8xi1> to vector<8x8xi32>
    %25 = arith.sitofp %24 : vector<8x8xi32> to vector<8x8xf32>
    %cst = arith.constant dense<0.000000e+00> : vector<8x48xf32>
    %26 = tpu.matmul %25, %19, %cst {dimension_numbers = #tpu.dot_dimension_numbers<[1], [0], [0], [1], [0, 0, 1, 1], [], []>} : vector<8x8xf32>, vector<8x48xf32>, vector<8x48xf32> -> vector<8x48xf32>
    %27 = vector.shape_cast %26 : vector<8x48xf32> to vector<1x8x48xf32>
    %28 = arith.addf %23, %27 : vector<1x8x48xf32>
    %c0_9 = arith.constant 0 : index
    %c0_10 = arith.constant 0 : index
    %c0_11 = arith.constant 0 : index
    %29 = vector.load %arg6[%c0_9, %c0_10, %c0_11] : memref<1x8x48xf32, #tpu.memory_space<vmem>>, vector<1x8x48xf32>
    tpu.vector_store %arg6[%c0_9, %c0_10, %c0_11], %28 {strides = array<i32>} : memref<1x8x48xf32, #tpu.memory_space<vmem>>, vector<1x8x48xf32>,
    %c0_12 = arith.constant 0 : index
    %c0_13 = arith.constant 0 : index
    %c0_14 = arith.constant 0 : index
    %30 = vector.load %arg7[%c0_12, %c0_13, %c0_14] : memref<1x8x1xi32, #tpu.memory_space<vmem>>, vector<1x8x1xi32>
    %31 = arith.extui %22 : vector<8x8xi1> to vector<8x8xi32>
    %cst_15 = arith.constant dense<0> : vector<8xi32>
    %32 = vector.multi_reduction <add>, %31, %cst_15 [1] : vector<8x8xi32> to vector<8xi32>
    %33 = vector.shape_cast %32 : vector<8xi32> to vector<8x1xi32>
    %34 = vector.shape_cast %33 : vector<8x1xi32> to vector<1x8x1xi32>
    %35 = arith.addi %30, %34 : vector<1x8x1xi32>
    %c0_16 = arith.constant 0 : index
    %c0_17 = arith.constant 0 : index
    %c0_18 = arith.constant 0 : index
    %36 = vector.load %arg7[%c0_16, %c0_17, %c0_18] : memref<1x8x1xi32, #tpu.memory_space<vmem>>, vector<1x8x1xi32>
    tpu.vector_store %arg7[%c0_16, %c0_17, %c0_18], %35 {strides = array<i32>} : memref<1x8x1xi32, #tpu.memory_space<vmem>>, vector<1x8x1xi32>,
    %c4_i32 = arith.constant 4 : i32
    %37 = arith.cmpi slt, %1, %c4_i32 : i32
    %38 = arith.extui %37 : i1 to i32
    %c0_i32_19 = arith.constant 0 : i32
    %39 = arith.cmpi ne, %38, %c0_i32_19 : i32
    scf.if %39 {
      %c0_20 = arith.constant 0 : index
      %c0_21 = arith.constant 0 : index
      %40 = vector.load %arg4[%c0_20, %c0_21] : memref<8x64xf32, #tpu.memory_space<vmem>>, vector<8x64xf32>
      %c0_22 = arith.constant 0 : index
      %c0_23 = arith.constant 0 : index
      %41 = vector.load %arg5[%c0_22, %c0_23] : memref<8x64xf32, #tpu.memory_space<vmem>>, vector<8x64xf32>
      %c8_i32_24 = arith.constant 8 : i32
      %42 = arith.muli %1, %c8_i32_24 : i32
      %43 = tpu.iota {dimensions = array<i32: 0>} : vector<8x64xi32>
      %44 = vector.broadcast %42 : i32 to vector<8x64xi32>
      %45 = arith.addi %44, %43 : vector<8x64xi32>
      %c28_i32_25 = arith.constant 28 : i32
      %46 = vector.broadcast %c28_i32_25 : i32 to vector<8x64xi32>
      %47 = arith.cmpi slt, %45, %46 : vector<8x64xi32>
      %48 = arith.subf %40, %41 : vector<8x64xf32>
      %cst_26 = arith.constant 0.000000e+00 : f32
      %49 = vector.broadcast %cst_26 : f32 to vector<8x64xf32>
      %50 = arith.select %47, %48, %49 : vector<8x64xi1>, vector<8x64xf32>
      %c0_27 = arith.constant 0 : index
      %c0_28 = arith.constant 0 : index
      %c0_29 = arith.constant 0 : index
      %51 = vector.load %arg8[%c0_27, %c0_28, %c0_29] : memref<1x1x1xf32, #tpu.memory_space<vmem>>, vector<1x1x1xf32>
      %52 = arith.mulf %50, %50 : vector<8x64xf32>
      %53 = vector.shape_cast %52 : vector<8x64xf32> to vector<1x8x64xf32>
      %cst_30 = arith.constant dense<0.000000e+00> : vector<1xf32>
      %54 = vector.multi_reduction <add>, %53, %cst_30 [1, 2] : vector<1x8x64xf32> to vector<1xf32>
      %55 = vector.shape_cast %54 : vector<1xf32> to vector<1x1x1xf32>
      %56 = vector.extract %55[0, 0, 0] : f32 from vector<1x1x1xf32>
      %57 = vector.broadcast %56 : f32 to vector<1x1x1xf32>
      %58 = arith.addf %51, %57 : vector<1x1x1xf32>
      %c0_31 = arith.constant 0 : index
      %c0_32 = arith.constant 0 : index
      %c0_33 = arith.constant 0 : index
      %59 = vector.load %arg8[%c0_31, %c0_32, %c0_33] : memref<1x1x1xf32, #tpu.memory_space<vmem>>, vector<1x1x1xf32>
      tpu.vector_store %arg8[%c0_31, %c0_32, %c0_33], %58 {strides = array<i32>} : memref<1x1x1xf32, #tpu.memory_space<vmem>>, vector<1x1x1xf32>,
    } else {
    }
    return
  }
  func.func @transform_0(%arg0: i32, %arg1: i32) -> (i32, i32) {
    %c2_i32 = arith.constant 2 : i32
    %0 = arith.muli %arg0, %c2_i32 : i32
    %1 = arith.addi %0, %arg1 : i32
    %c3_i32 = arith.constant 3 : i32
    %2 = arith.minsi %1, %c3_i32 : i32
    %c0_i32 = arith.constant 0 : i32
    %c0_i32_0 = arith.constant 0 : i32
    return %2, %c0_i32 : i32, i32
  }
  func.func @transform_1(%arg0: i32, %arg1: i32) -> (i32, i32, i32) {
    %c2_i32 = arith.constant 2 : i32
    %0 = arith.muli %arg0, %c2_i32 : i32
    %1 = arith.addi %0, %arg1 : i32
    %c0_i32 = arith.constant 0 : i32
    %c0_i32_0 = arith.constant 0 : i32
    %c0_i32_1 = arith.constant 0 : i32
    return %1, %c0_i32, %c0_i32_0 : i32, i32, i32
  }
  func.func @transform_2(%arg0: i32, %arg1: i32) -> (i32, i32) {
    %c2_i32 = arith.constant 2 : i32
    %0 = arith.muli %arg0, %c2_i32 : i32
    %1 = arith.addi %0, %arg1 : i32
    %c3_i32 = arith.constant 3 : i32
    %2 = arith.minsi %1, %c3_i32 : i32
    %c0_i32 = arith.constant 0 : i32
    %c0_i32_0 = arith.constant 0 : i32
    return %2, %c0_i32 : i32, i32
  }
  func.func @transform_3(%arg0: i32, %arg1: i32) -> (i32, i32) {
    %c2_i32 = arith.constant 2 : i32
    %0 = arith.muli %arg0, %c2_i32 : i32
    %1 = arith.addi %0, %arg1 : i32
    %c3_i32 = arith.constant 3 : i32
    %2 = arith.minsi %1, %c3_i32 : i32
    %c0_i32 = arith.constant 0 : i32
    %c0_i32_0 = arith.constant 0 : i32
    return %2, %c0_i32 : i32, i32
  }
  func.func @transform_4(%arg0: i32, %arg1: i32) -> (i32, i32, i32) {
    %c0_i32 = arith.constant 0 : i32
    %c0_i32_0 = arith.constant 0 : i32
    %c0_i32_1 = arith.constant 0 : i32
    return %arg0, %c0_i32, %c0_i32_0 : i32, i32, i32
  }
  func.func @transform_5(%arg0: i32, %arg1: i32) -> (i32, i32, i32) {
    %c0_i32 = arith.constant 0 : i32
    %c0_i32_0 = arith.constant 0 : i32
    %c0_i32_1 = arith.constant 0 : i32
    return %arg0, %c0_i32, %c0_i32_0 : i32, i32, i32
  }
  func.func @transform_6(%arg0: i32, %arg1: i32) -> (i32, i32, i32) {
    %c0_i32 = arith.constant 0 : i32
    %c0_i32_0 = arith.constant 0 : i32
    %c0_i32_1 = arith.constant 0 : i32
    return %arg0, %c0_i32, %c0_i32_0 : i32, i32, i32
  }
}

</mosaic_0001>

<bundles_post_ra>
// kernel: mmd_loss.1
= control target key start
LH: loop header
LB: loop body
LE: loop exit
PB: predicated region body
PF: predicated region fallthrough
CT: control target
= control target key end

     0   :  { %s909_s21 = smov 0   ;;  %s911_s22 = smov 0   ;;  %s1020_s0 = inlined_call_operand.vmem [shape: f32[28,48], index: 0, kind: input, shape index: {}]   ;;  %s1021_s1 = inlined_call_operand.vmem [shape: s32[4,1,8], index: 1, kind: input, shape index: {}]   ;;  %s1022_s2 = inlined_call_operand.vmem [shape: f32[28,64], index: 2, kind: input, shape index: {}]   ;;  %s1023_s3 = inlined_call_operand.vmem [shape: f32[28,64], index: 3, kind: input, shape index: {}]   ;;  %s1024_s4 = inlined_call_operand.vmem [shape: f32[2,8,48], index: 4, kind: output, shape index: {0}]   ;;  %s1025_s5 = inlined_call_operand.vmem [shape: s32[2,8,1], index: 5, kind: output, shape index: {1}]   ;;  %s1026_s6 = inlined_call_operand.vmem [shape: f32[2,1,1], index: 6, kind: output, shape index: {2}]  }
   0x1   :  { %1027 = sst [smem:[#allocation2_spill]] %s1021_s1  ;;  %s913_s23 = smov 0  }
   0x2   :  { %s915_s24 = smov 0   ;;  %s917_s25 = smov 0  }
   0x3 LB: > { %s26_s26 = sadd.s32 1, %s859_s23  ;;  %s29_s27 = sadd.s32 1, %s863_s24  ;;  %s867_s25 = sphi %s917_s25, %s17_s25   ;;  %s863_s24 = sphi %s915_s24, %s1032_s24   ;;  %s859_s23 = sphi %s913_s23, %s1031_s23   ;;  %s855_s22 = sphi %s911_s22, %s1030_s22   ;;  %s851_s21 = sphi %s909_s21, %s1029_s21  }
   0x4   : > { %p27_p0 = scmp.ge.s32.totalorder %s26_s26, 2  ;;  %p745_p1 = scmp.ge.s32.totalorder %s867_s25, 1 }
   0x5   : > { %p310_p2 = scmp.lt.s32.totalorder %s867_s25, 5 }
   0x6   : > { %s1034_s26 = smov (%p27_p0, %s26_s26), 0  ;;  %s1036_s27 = smov (!%p27_p0, %s29_s27), %s863_s24 }
   0x7   : > { %p311_p3 = pnand %p745_p1, %p310_p2  ;;  %p31_p4 = scmp.ge.s32.totalorder %s1036_s27, 2 }
   0x8   : > { %s746_s28 = sshll.u32 (!%p311_p3), %s855_s22, 1  ;;  %p413_p5 = scmp.lt.s32.totalorder (!%p311_p3), %s855_s22, 1 }
   0x9   : > { %s1038_s27 = smov (%p31_p4, %s1036_s27), 0  ;;  %314 = sbr.rel (%p311_p3) target bundleno = 257 (0x101), region = 36 }
   0xa   : > { %s942_s29 = sadd.s32 (!%p311_p3), %s851_s21, %s746_s28  ;;  %s1028_s1 = sld [smem:[#allocation2_spill]] (!%p311_p3) }
   0xb   : > { %p372_p6 = scmp.lt.s32.totalorder (!%p311_p3), %s942_s29, 3  ;;  %p765_p7 = scmp.ne.s32.totalorder (!%p311_p3), %s851_s21, 0 }
  0x10   : > { %s1040_s22 = smov (!%p413_p5, %s855_s22), 1  ;;  %vm430_vm0 = vcmask (!%p765_p7), 392192   ;;  %vm432_vm1 = vcmask (!%p765_p7), 7168   ;;  %v869_v0 = vmov (!%p765_p7), 0.0   ;;  %v870_v1 = vmov (!%p765_p7), 0  }
  0x11   : > { %s946_s30 = scalar_select %p372_p6, %s942_s29, 3 }
  0x12   : > { %s762_s7 = sshll.u32 %s1040_s22, 3  ;;  %s951_s10 = scalar_lea.vmem %s1026_s6, %s1040_s22  ;;  %vm434_vm2 = vcmask (!%p765_p7), 0  }
  0x13   : > { %s375_s11 = scalar_select %p372_p6, %s946_s30, 3 }
  0x14   : > { %s386_s14 = scalar_lea.vmem %s1028_s1, %s946_s30  ;;  %s961_s17 = scalar_lea.vmem %s1024_s4, %s762_s7  ;;  %435 = vst.msk [vmem:[%s951_s10] sm:$0x1] (!%p765_p7), %vm434_vm2, %v869_v0 }
  0x15   : > { %s963_s18 = sshll.u32 %s375_s11, 3  ;;  %s968_s22 = scalar_lea.vmem %s1025_s5, %s762_s7  ;;  %431 = vst.msk [vmem:[%s961_s17] sm:$0xff] (!%p765_p7), %vm430_vm0, %v869_v0 }
  0x16   : > { %s377_s9 = scalar_lea.vmem %s1020_s0, %s963_s18  ;;  %s396_s15 = scalar_lea.vmem %s1022_s2, %s963_s18  ;;  %433 = vst.msk [vmem:[%s968_s22] sm:$0xff] (!%p765_p7), %vm432_vm1, %v870_v1 }
  0x17   : > { %s408_s11 = scalar_lea.vmem %s1023_s3, %s963_s18  ;;  %429 = sbr.rel (%p765_p7) target bundleno = 30 (0x1e), region = 40 }
  0x1e PF: > { %s766_s7 = sshll.u32 %s946_s30, 3  ;;  %v441_v2 = vlaneseq  ;;  %v871_v3 = vmov 0.0   ;;  %vm872_vm3 = vmmov 0   ;;  %v767_v5 = vld [vmem:[%s386_s14] ss:$0 sm:$0xff]  ;;  %vm457_vm5 = vcmask 64512  }
  0x1f   : > { %777 = vmatprep.subr.mxu0 %v871_v3  ;;  %v443_v4 = vstv %s766_s7  ;;  %779 = vmatprep.mubr.msk.f32.mxu0 %vm872_vm3, %v871_v3  ;;  %v436_v7 = vld [vmem:[%s377_s9] sm:$0xff]  ;;  %v873_v10 = vmov 0   ;;  %vm549_vm7 = vcmask 7168   ;;  %vm532_vm8 = vcmask 392192   ;;  %p771_p8 = scmp.ge.s32.totalorder %s942_s29, 4 }
  0x20   : > { %v442_v6 = vshrl.u32 %v441_v2, 7  ;;  %v534_v22 = vld [vmem:[%s968_s22] sm:$0xff]  ;;  %s772_s19 = sshll.u32 (!%p771_p8), %s942_s29, 3  ;;  %vm565_vm10 = vcmask (!%p771_p8), 523264   ;;  %vm578_vm11 = vcmask (!%p771_p8), 0  }
  0x21   : > { %v454_v25 = vld [vmem:[%s961_s17] sm:$0xff]  ;;  %v558_v31 = vstv (!%p771_p8), %s772_s19 }
  0x22   : > { %v444_v8 = vadd.s32 %v443_v4, %v442_v6  ;;  %vm453_vm4 = vcmp.eq.s32.totalorder %v442_v6, %v767_v5  ;;  %v555_v29 = vld [vmem:[%s396_s15] sm:$0xff] (!%p771_p8)  ;;  %v559_v33 = vadd.s32 (!%p771_p8), %v558_v31, %v442_v6 }
  0x23   : > { %v768_v9 = vsel %vm453_vm4, 1.0, %v871_v3  ;;  %v455_v11 = vsel %vm453_vm4, 1, %v873_v10  ;;  %v556_v30 = vld [vmem:[%s408_s11] sm:$0xff] (!%p771_p8) }
  0x24   : > { %vm445_vm6 = vcmp.lt.s32.totalorder %v444_v8, 28  ;;  %v535_v12 = vsel %vm457_vm5, %v455_v11, 0  ;;  %v561_v32 = vsub.f32 (!%p771_p8), %v555_v29, %v556_v30  ;;  %vm560_vm9 = vcmp.lt.s32.totalorder (!%p771_p8), %v559_v33, 28  ;;  %v563_v44 = vld [vmem:[%s951_s10] sm:$0x1] (!%p771_p8) }
  0x25   : > { %778 = vmatpush3.msk.msra.mxu0 %vm445_vm6, %v436_v7  ;;  %v537_v13 = vshrl.u32 %v535_v12, 16  ;;  %v536_v14 = vand.u32 65535, %v535_v12 }
  0x26   : > { %780 = vmatmul.mubr.msk.f32.vlgmr.msra.gmra.mrb[0].mxu0 %vm457_vm5, %v768_v9  ;;  %v562_v34 = vsel (!%p771_p8), %vm560_vm9, %v561_v32, 0.0 }
  0x27   : > { %v539_v15 = vcvt.s32.f32 %v537_v13  ;;  %v538_v16 = vcvt.s32.f32 %v536_v14  ;;  %v564_v35 = vmul.f32 (!%p771_p8), %v562_v34, %v562_v34 }
  0x29   : > { %542 = vadd.xlane.f32.xlu0 %v539_v15  ;;  %v566_v36 = vsel (!%p771_p8), %vm565_vm10, %v564_v35, 0.0 }
  0x2d   : > { %540 = vadd.xlane.f32.xlu0 %v538_v16 }
  0x31   : > { %567 = vadd.xlane.f32.xlu0 (!%p771_p8), %v566_v36 }
  0xb6   : > { %v543_v17 = vpop.xlane.xlu0 %542 }
  0xb7   : > { %v545_v18 = vcvt.f32.s32 %v543_v17 }
  0xb9   : > { %v546_v19 = vshll.u32 %v545_v18, 16 }
  0xba   : > { %v541_v20 = vpop.xlane.xlu0 %540 }
  0xbb   : > { %v544_v21 = vcvt.f32.s32 %v541_v20 }
  0xbd   : > { %v547_v23 = vadd.s32 %v546_v19, %v544_v21 }
  0xbe   : > { %v568_v37 = vpop.xlane.xlu0 (!%p771_p8), %567 }
  0xbf   : > { %v548_v24 = vadd.s32 %v547_v23, %v534_v22  ;;  %v569_v38 = vrot.slane (!%p771_p8), %v568_v37, 4 }
  0xc1   : > { %550 = vst.msk [vmem:[%s968_s22] sm:$0xff] %vm549_vm7, %v548_v24  ;;  %v570_v39 = vadd.f32 (!%p771_p8), %v569_v38, %v568_v37 }
  0xc3   : > { %v571_v40 = vrot.slane (!%p771_p8), %v570_v39, 2 }
  0xc5   : > { %v572_v41 = vadd.f32 (!%p771_p8), %v571_v40, %v570_v39 }
  0xc7   : > { %v573_v42 = vrot.slane (!%p771_p8), %v572_v41, 1 }
  0xc9   : > { %v574_v43 = vadd.f32 (!%p771_p8), %v573_v42, %v572_v41 }
  0xcb   : > { %782 = vpush (!%p771_p8), %v574_v43 }
  0xf6   : > { %554 = sbr.rel (%p771_p8) target bundleno = 257 (0x101), region = 44 }
  0xf9   : > { %v527_v26 = vpop.f32.mrb[0].mxu0 }
  0xfa   : > { %v531_v27 = vadd.f32 %v527_v26, %v454_v25  ;;  %v781_v28 = vpop.f32.mrb[1].mxu0 }
  0xfc   : > { %533 = vst.msk [vmem:[%s961_s17] sm:$0xff] %vm532_vm8, %v531_v27  ;;  %s783_s29 = spop (!%p771_p8), %782 }
  0xfd   : > { %v576_v45 = vstv %s783_s29 }
  0xfe   : > { %v577_v46 = vadd.f32 %v576_v45, %v563_v44 }
 0x100   : > { %579 = vst.msk [vmem:[%s951_s10] sm:$0x1] %vm578_vm11, %v577_v46 }
 0x101 PF: > { %s17_s25 = sadd.s32 1, %s867_s25   ;;  %s1029_s21 = smov %s859_s23 }
 0x102   : > { %p14_p9 = scmp.ge.s32.totalorder %s17_s25, 6   ;;  %s1030_s22 = smov %s863_s24 }
 0x103   : > { %s1031_s23 = smov %s1034_s26  ;;  %s1032_s24 = smov %s1038_s27 }
 0x104   :  { %16 = sbr.rel (!%p14_p9) target bundleno = 3 (0x3), region = 107 }

</bundles_post_ra>
